<compile_context>
chip_gen: v7x
topology: tpu7x:2x2x1
jax: 0.10.0
libtpu: 0.0.40
codegen_flags: <defaults>
</compile_context>

<pallas_src>
import jax
import jax.numpy as jnp
from jax.experimental import pallas as pl
from jax.experimental.pallas import tpu as pltpu

_LANE = 128
_SUBLANE = 8


def _round_up(x, m):
    return ((x + m - 1) // m) * m


def _pad2(a, rows, cols):
    r, c = a.shape
    return jnp.pad(a, ((0, rows - r), (0, cols - c)))


# ---------------------------------------------------------------------------
# Kernel
# ---------------------------------------------------------------------------
def recurrent_agent_kernel(
    obs_ref, h_ref,                           # activations  [tb, Op], [tb, Hp]
    w_enc_ref, w_i_ref, w_h_ref, w_out_ref,   # fused weights
    b_ref,                                    # packed biases [1, 5*Hp + Ap]
    logits_ref, h_out_ref,                    # outputs      [tb, Ap], [tb, Hp]
):
    hp = h_ref.shape[1]

    # Packed bias layout: [ b_enc | b_ir+b_hr | b_iz+b_hz | b_in | b_hn | b_out ]
    b_enc = b_ref[:, 0:hp]
    b_gates = b_ref[:, hp:4 * hp]
    b_hn = b_ref[:, 4 * hp:5 * hp]
    b_out = b_ref[:, 5 * hp:]

    # ---- encoder: Linear + ReLU ----
    x = jnp.dot(obs_ref[...], w_enc_ref[...], preferred_element_type=jnp.float32)
    x = jnp.maximum(x + b_enc, 0.0)

    h = h_ref[...]

    # ---- GRU cell (nn.GRUCell semantics), two fused [., H]x[H, 3H] GEMMs ----
    gi = jnp.dot(x, w_i_ref[...], preferred_element_type=jnp.float32) + b_gates
    gh = jnp.dot(h, w_h_ref[...], preferred_element_type=jnp.float32)

    r = jax.nn.sigmoid(gi[:, 0:hp] + gh[:, 0:hp])
    z = jax.nn.sigmoid(gi[:, hp:2 * hp] + gh[:, hp:2 * hp])
    n = jnp.tanh(gi[:, 2 * hp:] + r * (gh[:, 2 * hp:] + b_hn))
    h_new = n + z * (h - n)            # == (1 - z) * n + z * h

    # ---- output head: Linear ----
    logits = jnp.dot(h_new, w_out_ref[...], preferred_element_type=jnp.float32) + b_out

    h_out_ref[...] = h_new.astype(h_out_ref.dtype)
    logits_ref[...] = logits.astype(logits_ref.dtype)


# ---------------------------------------------------------------------------
# Parameter packing (one-time): fuse gate weights, pre-sum / pack biases,
# zero-pad every feature dim to a multiple of 128 lanes.
# ---------------------------------------------------------------------------
def pack_params(params, obs_dim, hidden, act):
    op = _round_up(obs_dim, _LANE)
    hp = _round_up(hidden, _LANE)
    ap = _round_up(act, _LANE)

    f32 = lambda a: a.astype(jnp.float32)

    w_enc = _pad2(f32(params["w_enc"]), op, hp)
    w_i = jnp.concatenate(
        [_pad2(f32(params[k]), hp, hp) for k in ("w_ir", "w_iz", "w_in")], axis=1)
    w_h = jnp.concatenate(
        [_pad2(f32(params[k]), hp, hp) for k in ("w_hr", "w_hz", "w_hn")], axis=1)
    w_out = _pad2(f32(params["w_out"]), hp, ap)

    b_enc = _pad2(f32(params["b_enc"]), 1, hp)
    b_r = _pad2(f32(params["b_ir"] + params["b_hr"]), 1, hp)   # only ever summed
    b_z = _pad2(f32(params["b_iz"] + params["b_hz"]), 1, hp)   # only ever summed
    b_in = _pad2(f32(params["b_in"]), 1, hp)
    b_hn = _pad2(f32(params["b_hn"]), 1, hp)
    b_out = _pad2(f32(params["b_out"]), 1, ap)
    b_pack = jnp.concatenate([b_enc, b_r, b_z, b_in, b_hn, b_out], axis=1)

    return {
        "w_enc": w_enc, "w_i": w_i, "w_h": w_h, "w_out": w_out, "b": b_pack,
        "dims": (obs_dim, hidden, act, op, hp, ap),
    }


# ---------------------------------------------------------------------------
# Wrapper
# ---------------------------------------------------------------------------
def recurrent_agent_forward(obs, h, packed, *, batch_tile=256):
    """obs: [B, obs_dim], h: [B, H] -> (logits [B, A], h_new [B, H])."""
    obs_dim, hidden, act, op, hp, ap = packed["dims"]
    B = obs.shape[0]

    tile_b = min(_round_up(B, _SUBLANE), batch_tile)
    bp = _round_up(B, tile_b)
    grid = (bp // tile_b,)

    obs_p = _pad2(obs.astype(jnp.float32), bp, op)
    h_p = _pad2(h.astype(jnp.float32), bp, hp)

    batch_map = lambda i: (i, 0)   # batch-tiled operands follow the grid
    const_map = lambda i: (0, 0)   # weights stay VMEM-resident across tiles

    in_specs = [
        pl.BlockSpec((tile_b, op), batch_map),
        pl.BlockSpec((tile_b, hp), batch_map),
        pl.BlockSpec(packed["w_enc"].shape, const_map),
        pl.BlockSpec(packed["w_i"].shape, const_map),
        pl.BlockSpec(packed["w_h"].shape, const_map),
        pl.BlockSpec(packed["w_out"].shape, const_map),
        pl.BlockSpec(packed["b"].shape, const_map),
    ]
    out_specs = (
        pl.BlockSpec((tile_b, ap), batch_map),
        pl.BlockSpec((tile_b, hp), batch_map),
    )
    out_shape = (
        jax.ShapeDtypeStruct((bp, ap), jnp.float32),
        jax.ShapeDtypeStruct((bp, hp), jnp.float32),
    )

    flops = 2 * bp * (op * hp + 2 * hp * 3 * hp + hp * ap)
    transcendentals = 3 * bp * hp
    bytes_accessed = 4 * (
        obs_p.size + h_p.size + packed["w_enc"].size + packed["w_i"].size
        + packed["w_h"].size + packed["w_out"].size + packed["b"].size
        + bp * ap + bp * hp)

    logits_p, h_new_p = pl.pallas_call(
        recurrent_agent_kernel,
        out_shape=out_shape,
        grid=grid,
        in_specs=in_specs,
        out_specs=out_specs,
        # Alias the (padded, freshly created) h input buffer to the h_new
        # output: saves one HBM output allocation + writeback buffer.
        input_output_aliases={1: 1},
        compiler_params=pltpu.CompilerParams(
            dimension_semantics=("parallel",),
        ),
        cost_estimate=pl.CostEstimate(
            flops=flops,
            transcendentals=transcendentals,
            bytes_accessed=bytes_accessed,
        ),
    )(obs_p, h_p, packed["w_enc"], packed["w_i"], packed["w_h"],
      packed["w_out"], packed["b"])

    return logits_p[:B, :act], h_new_p[:B, :hidden]


# ---------------------------------------------------------------------------
# Pure-JAX reference (mirrors the PyTorch module) + param init
# ---------------------------------------------------------------------------
def _reference_forward(obs, h, p):
    x = jnp.maximum(obs @ p["w_enc"] + p["b_enc"], 0.0)
    r = jax.nn.sigmoid(x @ p["w_ir"] + p["b_ir"] + h @ p["w_hr"] + p["b_hr"])
    z = jax.nn.sigmoid(x @ p["w_iz"] + p["b_iz"] + h @ p["w_hz"] + p["b_hz"])
    n = jnp.tanh(x @ p["w_in"] + p["b_in"] + r * (h @ p["w_hn"] + p["b_hn"]))
    h_new = (1.0 - z) * n + z * h
    logits = h_new @ p["w_out"] + p["b_out"]
    return logits, h_new


def init_params(key, obs_dim, hidden, act):
    ks = jax.random.split(key, 16)
    s = 0.1

    def w(k, shape):
        return (s * jax.random.normal(k, shape)).astype(jnp.float32)

    return {
        "w_enc": w(ks[0], (obs_dim, hidden)), "b_enc": w(ks[1], (1, hidden)),
        "w_ir": w(ks[2], (hidden, hidden)), "w_iz": w(ks[3], (hidden, hidden)),
        "w_in": w(ks[4], (hidden, hidden)), "w_hr": w(ks[5], (hidden, hidden)),
        "w_hz": w(ks[6], (hidden, hidden)), "w_hn": w(ks[7], (hidden, hidden)),
        "b_ir": w(ks[8], (1, hidden)), "b_iz": w(ks[9], (1, hidden)),
        "b_in": w(ks[10], (1, hidden)), "b_hr": w(ks[11], (1, hidden)),
        "b_hz": w(ks[12], (1, hidden)), "b_hn": w(ks[13], (1, hidden)),
        "w_out": w(ks[14], (obs_dim * 0 + hidden, act)), "b_out": w(ks[15], (1, act)),
    }


if __name__ == "__main__":
    B, OBS_DIM, HIDDEN, ACT = 8, 16, 32, 8

    key = jax.random.PRNGKey(0)
    k_obs, k_h, k_p = jax.random.split(key, 3)

    obs = jax.random.normal(k_obs, (B, OBS_DIM), dtype=jnp.float32)
    # init_hidden() returns zeros(1, hidden) expanded to the batch; also
    # exercise a non-zero hidden state.
    h0 = 0.05 * jax.random.normal(k_h, (B, HIDDEN), dtype=jnp.float32)

    params = init_params(k_p, OBS_DIM, HIDDEN, ACT)
    packed = pack_params(params, OBS_DIM, HIDDEN, ACT)

    logits, h_new = recurrent_agent_forward(obs, h0, packed)
    jax.block_until_ready((logits, h_new))

    ref_logits, ref_h = _reference_forward(obs, h0, params)
    assert jnp.allclose(logits, ref_logits, atol=1e-5, rtol=1e-5)
    assert jnp.allclose(h_new, ref_h, atol=1e-5, rtol=1e-5)

    print("KERNEL_OK")
</pallas_src>

<mosaic_0001>
module attributes {stable_mosaic.version = 11 : i64} {
  func.func @recurrent_agent_kernel(%arg0: i32, %arg1: memref<8x128xf32, #tpu.memory_space<vmem>>, %arg2: memref<8x128xf32, #tpu.memory_space<vmem>>, %arg3: memref<128x128xf32, #tpu.memory_space<vmem>>, %arg4: memref<128x384xf32, #tpu.memory_space<vmem>>, %arg5: memref<128x384xf32, #tpu.memory_space<vmem>>, %arg6: memref<128x128xf32, #tpu.memory_space<vmem>>, %arg7: memref<1x768xf32, #tpu.memory_space<vmem>>, %arg8: memref<8x128xf32, #tpu.memory_space<vmem>>, %arg9: memref<8x128xf32, #tpu.memory_space<vmem>>) attributes {dimension_semantics = [#tpu.dimension_semantics<parallel>], iteration_bounds = array<i64: 1>, scalar_prefetch = 0 : i64, scratch_operands = 0 : i64, tpu.core_type = #tpu.core_type<tc>, window_params = [{transform_indices = @transform_0, window_bounds = array<i64: 8, 128>}, {transform_indices = @transform_1, window_bounds = array<i64: 8, 128>}, {pipeline_mode = #tpu.pipeline_mode<synchronous>, transform_indices = @transform_2, window_bounds = array<i64: 128, 128>}, {pipeline_mode = #tpu.pipeline_mode<synchronous>, transform_indices = @transform_3, window_bounds = array<i64: 128, 384>}, {pipeline_mode = #tpu.pipeline_mode<synchronous>, transform_indices = @transform_4, window_bounds = array<i64: 128, 384>}, {pipeline_mode = #tpu.pipeline_mode<synchronous>, transform_indices = @transform_5, window_bounds = array<i64: 128, 128>}, {pipeline_mode = #tpu.pipeline_mode<synchronous>, transform_indices = @transform_6, window_bounds = array<i64: 1, 768>}, {transform_indices = @transform_7, window_bounds = array<i64: 8, 128>}, {transform_indices = @transform_8, window_bounds = array<i64: 8, 128>}]} {
    %c0 = arith.constant 0 : index
    %c0_0 = arith.constant 0 : index
    %0 = vector.load %arg7[%c0, %c0_0] : memref<1x768xf32, #tpu.memory_space<vmem>>, vector<1x128xf32>
    %c0_1 = arith.constant 0 : index
    %c128 = arith.constant 128 : index
    %1 = vector.load %arg7[%c0_1, %c128] : memref<1x768xf32, #tpu.memory_space<vmem>>, vector<1x384xf32>
    %c0_2 = arith.constant 0 : index
    %c512 = arith.constant 512 : index
    %2 = vector.load %arg7[%c0_2, %c512] : memref<1x768xf32, #tpu.memory_space<vmem>>, vector<1x128xf32>
    %c0_3 = arith.constant 0 : index
    %c640 = arith.constant 640 : index
    %3 = vector.load %arg7[%c0_3, %c640] : memref<1x768xf32, #tpu.memory_space<vmem>>, vector<1x128xf32>
    %c0_4 = arith.constant 0 : index
    %c0_5 = arith.constant 0 : index
    %4 = vector.load %arg1[%c0_4, %c0_5] : memref<8x128xf32, #tpu.memory_space<vmem>>, vector<8x128xf32>
    %c0_6 = arith.constant 0 : index
    %c0_7 = arith.constant 0 : index
    %5 = vector.load %arg3[%c0_6, %c0_7] : memref<128x128xf32, #tpu.memory_space<vmem>>, vector<128x128xf32>
    %cst = arith.constant dense<0.000000e+00> : vector<8x128xf32>
    %6 = tpu.matmul %4, %5, %cst {dimension_numbers = #tpu.dot_dimension_numbers<[1], [0], [0], [1], [0, 0, 1, 1], [], []>} : vector<8x128xf32>, vector<128x128xf32>, vector<8x128xf32> -> vector<8x128xf32>
    %7 = vector.broadcast %0 : vector<1x128xf32> to vector<8x128xf32>
    %8 = arith.addf %6, %7 : vector<8x128xf32>
    %cst_8 = arith.constant 0.000000e+00 : f32
    %9 = vector.broadcast %cst_8 : f32 to vector<8x128xf32>
    %10 = arith.maximumf %8, %9 : vector<8x128xf32>
    %c0_9 = arith.constant 0 : index
    %c0_10 = arith.constant 0 : index
    %11 = vector.load %arg2[%c0_9, %c0_10] : memref<8x128xf32, #tpu.memory_space<vmem>>, vector<8x128xf32>
    %c0_11 = arith.constant 0 : index
    %c0_12 = arith.constant 0 : index
    %12 = vector.load %arg4[%c0_11, %c0_12] : memref<128x384xf32, #tpu.memory_space<vmem>>, vector<128x384xf32>
    %cst_13 = arith.constant dense<0.000000e+00> : vector<8x384xf32>
    %13 = tpu.matmul %10, %12, %cst_13 {dimension_numbers = #tpu.dot_dimension_numbers<[1], [0], [0], [1], [0, 0, 1, 1], [], []>} : vector<8x128xf32>, vector<128x384xf32>, vector<8x384xf32> -> vector<8x384xf32>
    %14 = vector.broadcast %1 : vector<1x384xf32> to vector<8x384xf32>
    %15 = arith.addf %13, %14 : vector<8x384xf32>
    %c0_14 = arith.constant 0 : index
    %c0_15 = arith.constant 0 : index
    %16 = vector.load %arg5[%c0_14, %c0_15] : memref<128x384xf32, #tpu.memory_space<vmem>>, vector<128x384xf32>
    %cst_16 = arith.constant dense<0.000000e+00> : vector<8x384xf32>
    %17 = tpu.matmul %11, %16, %cst_16 {dimension_numbers = #tpu.dot_dimension_numbers<[1], [0], [0], [1], [0, 0, 1, 1], [], []>} : vector<8x128xf32>, vector<128x384xf32>, vector<8x384xf32> -> vector<8x384xf32>
    %18 = vector.extract_strided_slice %15 {offsets = [0, 0], sizes = [8, 128], strides = [1, 1]} : vector<8x384xf32> to vector<8x128xf32>
    %19 = vector.extract_strided_slice %17 {offsets = [0, 0], sizes = [8, 128], strides = [1, 1]} : vector<8x384xf32> to vector<8x128xf32>
    %20 = arith.addf %18, %19 : vector<8x128xf32>
    %21 = arith.negf %20 : vector<8x128xf32>
    %22 = math.exp %21 : vector<8x128xf32>
    %cst_17 = arith.constant 1.000000e+00 : f32
    %23 = vector.broadcast %cst_17 : f32 to vector<8x128xf32>
    %24 = arith.addf %23, %22 : vector<8x128xf32>
    %25 = arith.divf %23, %24 : vector<8x128xf32>
    %26 = vector.extract_strided_slice %15 {offsets = [0, 128], sizes = [8, 128], strides = [1, 1]} : vector<8x384xf32> to vector<8x128xf32>
    %27 = vector.extract_strided_slice %17 {offsets = [0, 128], sizes = [8, 128], strides = [1, 1]} : vector<8x384xf32> to vector<8x128xf32>
    %28 = arith.addf %26, %27 : vector<8x128xf32>
    %29 = arith.negf %28 : vector<8x128xf32>
    %30 = math.exp %29 : vector<8x128xf32>
    %cst_18 = arith.constant 1.000000e+00 : f32
    %31 = vector.broadcast %cst_18 : f32 to vector<8x128xf32>
    %32 = arith.addf %31, %30 : vector<8x128xf32>
    %33 = arith.divf %31, %32 : vector<8x128xf32>
    %34 = vector.extract_strided_slice %15 {offsets = [0, 256], sizes = [8, 128], strides = [1, 1]} : vector<8x384xf32> to vector<8x128xf32>
    %35 = vector.extract_strided_slice %17 {offsets = [0, 256], sizes = [8, 128], strides = [1, 1]} : vector<8x384xf32> to vector<8x128xf32>
    %36 = vector.broadcast %2 : vector<1x128xf32> to vector<8x128xf32>
    %37 = arith.addf %35, %36 : vector<8x128xf32>
    %38 = arith.mulf %25, %37 : vector<8x128xf32>
    %39 = arith.addf %34, %38 : vector<8x128xf32>
    %40 = math.tanh %39 : vector<8x128xf32>
    %41 = arith.subf %11, %40 : vector<8x128xf32>
    %42 = arith.mulf %33, %41 : vector<8x128xf32>
    %43 = arith.addf %40, %42 : vector<8x128xf32>
    %c0_19 = arith.constant 0 : index
    %c0_20 = arith.constant 0 : index
    %44 = vector.load %arg6[%c0_19, %c0_20] : memref<128x128xf32, #tpu.memory_space<vmem>>, vector<128x128xf32>
    %cst_21 = arith.constant dense<0.000000e+00> : vector<8x128xf32>
    %45 = tpu.matmul %43, %44, %cst_21 {dimension_numbers = #tpu.dot_dimension_numbers<[1], [0], [0], [1], [0, 0, 1, 1], [], []>} : vector<8x128xf32>, vector<128x128xf32>, vector<8x128xf32> -> vector<8x128xf32>
    %46 = vector.broadcast %3 : vector<1x128xf32> to vector<8x128xf32>
    %47 = arith.addf %45, %46 : vector<8x128xf32>
    %c0_22 = arith.constant 0 : index
    %c0_23 = arith.constant 0 : index
    %48 = vector.load %arg9[%c0_22, %c0_23] : memref<8x128xf32, #tpu.memory_space<vmem>>, vector<8x128xf32>
    tpu.vector_store %arg9[%c0_22, %c0_23], %43 {strides = array<i32>} : memref<8x128xf32, #tpu.memory_space<vmem>>, vector<8x128xf32>,
    %c0_24 = arith.constant 0 : index
    %c0_25 = arith.constant 0 : index
    %49 = vector.load %arg8[%c0_24, %c0_25] : memref<8x128xf32, #tpu.memory_space<vmem>>, vector<8x128xf32>
    tpu.vector_store %arg8[%c0_24, %c0_25], %47 {strides = array<i32>} : memref<8x128xf32, #tpu.memory_space<vmem>>, vector<8x128xf32>,
    return
  }
  func.func @transform_0(%arg0: i32) -> (i32, i32) {
    %c0_i32 = arith.constant 0 : i32
    %c0_i32_0 = arith.constant 0 : i32
    return %arg0, %c0_i32 : i32, i32
  }
  func.func @transform_1(%arg0: i32) -> (i32, i32) {
    %c0_i32 = arith.constant 0 : i32
    %c0_i32_0 = arith.constant 0 : i32
    return %arg0, %c0_i32 : i32, i32
  }
  func.func @transform_2(%arg0: i32) -> (i32, i32) {
    %c0_i32 = arith.constant 0 : i32
    %c0_i32_0 = arith.constant 0 : i32
    %c0_i32_1 = arith.constant 0 : i32
    return %c0_i32, %c0_i32_0 : i32, i32
  }
  func.func @transform_3(%arg0: i32) -> (i32, i32) {
    %c0_i32 = arith.constant 0 : i32
    %c0_i32_0 = arith.constant 0 : i32
    %c0_i32_1 = arith.constant 0 : i32
    return %c0_i32, %c0_i32_0 : i32, i32
  }
  func.func @transform_4(%arg0: i32) -> (i32, i32) {
    %c0_i32 = arith.constant 0 : i32
    %c0_i32_0 = arith.constant 0 : i32
    %c0_i32_1 = arith.constant 0 : i32
    return %c0_i32, %c0_i32_0 : i32, i32
  }
  func.func @transform_5(%arg0: i32) -> (i32, i32) {
    %c0_i32 = arith.constant 0 : i32
    %c0_i32_0 = arith.constant 0 : i32
    %c0_i32_1 = arith.constant 0 : i32
    return %c0_i32, %c0_i32_0 : i32, i32
  }
  func.func @transform_6(%arg0: i32) -> (i32, i32) {
    %c0_i32 = arith.constant 0 : i32
    %c0_i32_0 = arith.constant 0 : i32
    %c0_i32_1 = arith.constant 0 : i32
    return %c0_i32, %c0_i32_0 : i32, i32
  }
  func.func @transform_7(%arg0: i32) -> (i32, i32) {
    %c0_i32 = arith.constant 0 : i32
    %c0_i32_0 = arith.constant 0 : i32
    return %arg0, %c0_i32 : i32, i32
  }
  func.func @transform_8(%arg0: i32) -> (i32, i32) {
    %c0_i32 = arith.constant 0 : i32
    %c0_i32_0 = arith.constant 0 : i32
    return %arg0, %c0_i32 : i32, i32
  }
}

</mosaic_0001>

<bundles_post_ra>
// kernel: tpu_custom_call.1
= control target key start
LH: loop header
LB: loop body
LE: loop exit
PB: predicated region body
PF: predicated region fallthrough
CT: control target
= control target key end

     0   :  { %14 = vsyncpa [#allocation3], 0  ;;  %s1523_s0 = inlined_call_operand.vmem [shape: f32[8,128], index: 0, kind: input, shape index: {}]   ;;  %s1524_s1 = inlined_call_operand.hbm [shape: f32[8,128], index: 1, kind: input, shape index: {}, may-alias: {1,8}]   ;;  %s1525_s2 = inlined_call_operand.hbm [shape: f32[128,128], index: 2, kind: input, shape index: {}]   ;;  %s1526_s3 = inlined_call_operand.hbm [shape: f32[128,384], index: 3, kind: input, shape index: {}]   ;;  %s1527_s4 = inlined_call_operand.hbm [shape: f32[128,384], index: 4, kind: input, shape index: {}]   ;;  %s1528_s5 = inlined_call_operand.hbm [shape: f32[128,128], index: 5, kind: input, shape index: {}]   ;;  %s1529_s6 = inlined_call_operand.vmem [shape: f32[1,768], index: 6, kind: input, shape index: {}]   ;;  %s1530_s7 = inlined_call_operand.hbm [shape: f32[8,128], index: 7, kind: output, shape index: {0}]   ;;  %s1531_s8 = inlined_call_operand.hbm [shape: f32[8,128], index: 8, kind: output, shape index: {1}, may-alias: {1,8}]  }
   0x1   :  { %15 = vsyncpa [#allocation6], 0 }
   0x2   :  { %16 = vsyncpa [#allocation9], 0 }
   0x3   :  { %17 = vsyncpa [#allocation4], 0 }
   0x4   :  { %18 = vsyncpa [#allocation13], 0  ;;  %s1306_s27 = smov [#allocation5]   ;;  %s1142_s9 = scalar_lea.hbm %s1525_s2, 2048 }
   0x5   :  { %s36_s28 = sshll.u32 %s1306_s27, 4  ;;  %p1143_p0 = scmp.ne.s32.totalorder %s1525_s2, %s1142_s9  ;;  %s37_s28 = int_to_ptr.vmem [resolvable:$true] %s36_s28 }
   0x6   :  { %p1146_p1 = scmp.lt.u32.totalorder %s1142_s9, %s1525_s2 }
   0x8   :  { %p1148_p2 = pnand %p1146_p1, %p1143_p0 }
   0xa   :  { %1151 = shalt.err (!%p1148_p2)
}
   0xb   :  { %s1152_s14 = scalar_lea.vmem %s37_s28, 2048  ;;  %p1157_p4 = scmp.lt.s32.totalorder %s37_s28, %s37_s28 }
   0xc   :  { %p1153_p3 = scmp.ne.s32.totalorder %s37_s28, %s1152_s14  ;;  %p1158_p5 = scmp.lt.s32.totalorder %s1152_s14, %s1152_s14 }
   0xe   :  { %p1159_p6 = por %p1158_p5, %p1157_p4 }
  0x10   :  { %p1160_p7 = pnand %p1159_p6, %p1153_p3 }
  0x12   :  { %1163 = shalt.err (!%p1160_p7)
}
  0x13   :  { %s1307_s15 = smov 128   ;;  %s1308_s16 = smov 8  }
  0x14   :  { %42 = dma.hbm_to_vmem [thread:$0]  %s1525_s2, 2048, %s37_s28, [#allocation6], %s1307_s15, %s1307_s15, %s1308_s16  }
  0x15   :  { %s1309_s19 = smov [#allocation8]   ;;  %s1310_s21 = smov [#allocation2]  }
  0x16   :  { %s60_s20 = sshll.u32 %s1309_s19, 4  ;;  %s27_s22 = sshll.u32 %s1310_s21, 4  ;;  %s61_s20 = int_to_ptr.vmem [resolvable:$true] %s60_s20  ;;  %s28_s22 = int_to_ptr.vmem [resolvable:$true] %s27_s22 }
  0x17   :  { %s1164_s25 = scalar_lea.hbm %s1527_s4, 6144 }
  0x18   :  { %p1165_p8 = scmp.ne.s32.totalorder %s1527_s4, %s1164_s25  ;;  %p1168_p9 = scmp.lt.u32.totalorder %s1164_s25, %s1527_s4 }
  0x1a   :  { %p1170_p10 = pnand %p1168_p9, %p1165_p8 }
  0x1c   :  { %1173 = shalt.err (!%p1170_p10)
}
  0x1d   :  { %s1174_s2 = scalar_lea.vmem %s61_s20, 6144  ;;  %p1179_p12 = scmp.lt.s32.totalorder %s61_s20, %s61_s20 }
  0x1e   :  { %p1175_p11 = scmp.ne.s32.totalorder %s61_s20, %s1174_s2  ;;  %p1180_p13 = scmp.lt.s32.totalorder %s1174_s2, %s1174_s2 }
  0x20   :  { %p1181_p0 = por %p1180_p13, %p1179_p12 }
  0x22   :  { %p1182_p1 = pnand %p1181_p0, %p1175_p11 }
  0x24   :  { %1185 = shalt.err (!%p1182_p1)
}
  0x25   :  { %s1311_s28 = smov 384   ;;  %s1312_s9 = smov 24  }
  0x26   :  { %66 = dma.hbm_to_vmem [thread:$0]  %s1527_s4, 6144, %s61_s20, [#allocation9], %s1311_s28, %s1311_s28, %s1312_s9  }
  0x27   :  { %s1186_s14 = scalar_lea.hbm %s1524_s1, 128 }
  0x28   :  { %p1187_p2 = scmp.ne.s32.totalorder %s1524_s1, %s1186_s14  ;;  %p1190_p3 = scmp.lt.u32.totalorder %s1186_s14, %s1524_s1 }
  0x2a   :  { %p1192_p4 = pnand %p1190_p3, %p1187_p2 }
  0x2c   :  { %1195 = shalt.err (!%p1192_p4)
}
  0x2d   :  { %s1196_s23 = scalar_lea.vmem %s28_s22, 128  ;;  %p1201_p6 = scmp.lt.s32.totalorder %s28_s22, %s28_s22 }
  0x2e   :  { %p1197_p5 = scmp.ne.s32.totalorder %s28_s22, %s1196_s23  ;;  %p1202_p7 = scmp.lt.s32.totalorder %s1196_s23, %s1196_s23 }
  0x30   :  { %p1203_p8 = por %p1202_p7, %p1201_p6 }
  0x32   :  { %p1204_p9 = pnand %p1203_p8, %p1197_p5 }
  0x34   :  { %1207 = shalt.err (!%p1204_p9)
}
  0x35   :  { %30 = dma.hbm_to_vmem [thread:$0]  %s1524_s1, 128, %s28_s22, [#allocation3]  }
  0x36   :  { %s1313_s24 = smov [#allocation7]   ;;  %s1314_s26 = smov [#allocation10]  }
  0x37   :  { %s48_s25 = sshll.u32 %s1313_s24, 4  ;;  %s72_s27 = sshll.u32 %s1314_s26, 4  ;;  %s49_s25 = int_to_ptr.vmem [resolvable:$true] %s48_s25  ;;  %s73_s27 = int_to_ptr.vmem [resolvable:$true] %s72_s27 }
  0x38   :  { %s1208_s2 = scalar_lea.hbm %s1526_s3, 6144 }
  0x39   :  { %p1209_p10 = scmp.ne.s32.totalorder %s1526_s3, %s1208_s2  ;;  %p1212_p11 = scmp.lt.u32.totalorder %s1208_s2, %s1526_s3 }
  0x3b   :  { %p1214_p12 = pnand %p1212_p11, %p1209_p10 }
  0x3d   :  { %1217 = shalt.err (!%p1214_p12)
}
  0x3e   :  { %s1218_s1 = scalar_lea.vmem %s49_s25, 6144  ;;  %p1223_p0 = scmp.lt.s32.totalorder %s49_s25, %s49_s25 }
  0x3f   :  { %p1219_p13 = scmp.ne.s32.totalorder %s49_s25, %s1218_s1  ;;  %p1224_p1 = scmp.lt.s32.totalorder %s1218_s1, %s1218_s1 }
  0x41   :  { %p1225_p2 = por %p1224_p1, %p1223_p0 }
  0x43   :  { %p1226_p3 = pnand %p1225_p2, %p1219_p13 }
  0x45   :  { %1229 = shalt.err (!%p1226_p3)
}
  0x46   :  { %54 = dma.hbm_to_vmem [thread:$0]  %s1526_s3, 6144, %s49_s25, [#allocation6], %s1311_s28, %s1311_s28, %s1312_s9  }
  0x47   :  { %s1230_s19 = scalar_lea.hbm %s1528_s5, 2048 }
  0x48   :  { %p1231_p4 = scmp.ne.s32.totalorder %s1528_s5, %s1230_s19  ;;  %p1234_p5 = scmp.lt.u32.totalorder %s1230_s19, %s1528_s5 }
  0x4a   :  { %p1236_p6 = pnand %p1234_p5, %p1231_p4 }
  0x4c   :  { %1239 = shalt.err (!%p1236_p6)
}
  0x4d   :  { %s1240_s24 = scalar_lea.vmem %s73_s27, 2048  ;;  %p1245_p8 = scmp.lt.s32.totalorder %s73_s27, %s73_s27 }
  0x4e   :  { %p1241_p7 = scmp.ne.s32.totalorder %s73_s27, %s1240_s24  ;;  %p1246_p9 = scmp.lt.s32.totalorder %s1240_s24, %s1240_s24 }
  0x50   :  { %p1247_p10 = por %p1246_p9, %p1245_p8 }
  0x52   :  { %p1248_p11 = pnand %p1247_p10, %p1241_p7 }
  0x54   :  { %1251 = shalt.err (!%p1248_p11)
}
  0x55   :  { %78 = dma.hbm_to_vmem [thread:$0]  %s1528_s5, 2048, %s73_s27, [#allocation9], %s1307_s15, %s1307_s15, %s1308_s16  }
  0x56   :  { %1296 = dma.done.wait [#allocation3], 128  }
  0x57   :  { %1297 = vsyncadd [#allocation3], 4294967168 }
  0x58   :  { %1298 = dma.done.wait [#allocation6], 8192  }
  0x59   :  { %1299 = vsyncadd [#allocation6], 4294959104 }
  0x5a   :  { %1300 = dma.done.wait [#allocation9], 8192  }
  0x5b   :  { %1301 = vsyncadd [#allocation9], 4294959104  ;;  %v1315_v0 = vmov 0.0|0.0   ;;  %vm1316_vm0 = vmmov 0   ;;  %v1317_v1 = vmov 0.0   ;;  %v101_v2 = vld [vmem:[#allocation5] sm:$0xff] }
  0x5c   :  { %954 = vmatprep.subr.bf16.mxu0 %v1315_v0  ;;  %846 = vmatprep.mubr.msk.f32.mxu0 %vm1316_vm0, %v1317_v1  ;;  %v102_v3 = vld [vmem:[#allocation5 + $0x8] sm:$0xff]  ;;  %v103_v4 = vld [vmem:[#allocation5 + $0x10] sm:$0xff]  ;;  %v104_v6 = vld [vmem:[#allocation5 + $0x18] sm:$0xff]  ;;  %s1318_s29 = smov [#allocation12]  }
  0x5d   :  { %323 = vmatprep.mubr.f32.mxu1 %v1317_v1  ;;  %v955_v5 = vpack.c.bf16 %v102_v3, %v101_v2  ;;  %v958_v7 = vpack.c.bf16 %v104_v6, %v103_v4  ;;  %v105_v8 = vld [vmem:[#allocation5 + $0x20] sm:$0xff]  ;;  %v106_v9 = vld [vmem:[#allocation5 + $0x28] sm:$0xff]  ;;  %v198_v13 = vld [vmem:[#allocation7 + $0x18] sm:$0xff]  ;;  %s726_s30 = sshll.u32 %s1318_s29, 4  ;;  %s727_s30 = int_to_ptr.vmem [resolvable:$true] %s726_s30 }
  0x5e   :  { %v196_v10 = vld [vmem:[#allocation7 + $0x8] sm:$0xff]  ;;  %v199_v11 = vld [vmem:[#allocation7 + $0x20] sm:$0xff]  ;;  %v961_v14 = vpack.c.bf16 %v106_v9, %v105_v8  ;;  %v107_v15 = vld [vmem:[#allocation5 + $0x30] sm:$0xff]  ;;  %s1252_s2 = scalar_lea.vmem %s727_s30, 128  ;;  %p1257_p13 = scmp.lt.s32.totalorder %s727_s30, %s727_s30 }
  0x5f   :  { %956 = vmatpush3.bf16.msra.mxu0 %v955_v5  ;;  %v195_v12 = vld [vmem:[#allocation7] sm:$0xff]  ;;  %v108_v16 = vld [vmem:[#allocation5 + $0x38] sm:$0xff]  ;;  %v978_v17 = vpack.c.bf16 %v199_v11, %v196_v10  ;;  %v205_v20 = vld [vmem:[#allocation7 + $0x50] sm:$0xff]  ;;  %p1253_p12 = scmp.ne.s32.totalorder %s727_s30, %s1252_s2  ;;  %p1258_p0 = scmp.lt.s32.totalorder %s1252_s2, %s1252_s2 }
  0x60   :  { %957 = vmatprep.subr.bf16.mxu0 %v1315_v0  ;;  %v980_v18 = vpack.c.bf16 %v198_v13, %v195_v12  ;;  %v202_v19 = vld [vmem:[#allocation7 + $0x38] sm:$0xff]  ;;  %v201_v21 = vld [vmem:[#allocation7 + $0x30] sm:$0xff]  ;;  %v204_v22 = vld [vmem:[#allocation7 + $0x48] sm:$0xff]  ;;  %v964_v27 = vpack.c.bf16 %v108_v16, %v107_v15 }
  0x61   :  { %979 = vmatprep.subr.bf16.mxu1 %v978_v17  ;;  %v982_v23 = vpack.c.bf16 %v205_v20, %v202_v19  ;;  %v208_v24 = vld [vmem:[#allocation7 + $0x68] sm:$0xff]  ;;  %v984_v25 = vpack.c.bf16 %v204_v22, %v201_v21  ;;  %v211_v26 = vld [vmem:[#allocation7 + $0x80] sm:$0xff]  ;;  %v210_v31 = vld [vmem:[#allocation7 + $0x78] sm:$0xff]  ;;  %p1259_p1 = por %p1258_p0, %p1257_p13 }
  0x62   :  { %981 = vmatpush1.bf16.msra.mxu1 %v980_v18  ;;  %v109_v28 = vld [vmem:[#allocation5 + $0x40] sm:$0xff]  ;;  %v986_v29 = vpack.c.bf16 %v211_v26, %v208_v24  ;;  %v110_v32 = vld [vmem:[#allocation5 + $0x48] sm:$0xff]  ;;  %v214_v33 = vld [vmem:[#allocation7 + $0x98] sm:$0xff] }
  0x63   :  { %959 = vmatpush3.bf16.msra.mxu0 %v958_v7  ;;  %983 = vmatprep.subr.bf16.mxu1 %v982_v23  ;;  %v207_v30 = vld [vmem:[#allocation7 + $0x60] sm:$0xff]  ;;  %v217_v34 = vld [vmem:[#allocation7 + $0xb0] sm:$0xff]  ;;  %v967_v36 = vpack.c.bf16 %v110_v32, %v109_v28  ;;  %v216_v40 = vld [vmem:[#allocation7 + $0xa8] sm:$0xff]  ;;  %p1260_p2 = pnand %p1259_p1, %p1253_p12 }
  0x64   :  { %960 = vmatprep.subr.bf16.mxu0 %v1315_v0  ;;  %v988_v35 = vpack.c.bf16 %v210_v31, %v207_v30  ;;  %v111_v37 = vld [vmem:[#allocation5 + $0x50] sm:$0xff]  ;;  %v990_v38 = vpack.c.bf16 %v217_v34, %v214_v33  ;;  %v112_v41 = vld [vmem:[#allocation5 + $0x58] sm:$0xff]  ;;  %v220_v42 = vld [vmem:[#allocation7 + $0xc8] sm:$0xff] }
  0x65   :  { %v213_v39 = vld [vmem:[#allocation7 + $0x90] sm:$0xff]  ;;  %v223_v43 = vld [vmem:[#allocation7 + $0xe0] sm:$0xff]  ;;  %v970_v45 = vpack.c.bf16 %v112_v41, %v111_v37  ;;  %v222_v49 = vld [vmem:[#allocation7 + $0xd8] sm:$0xff] }
  0x66   :  { %985 = vmatpush1.bf16.msra.mxu1 %v984_v25  ;;  %v992_v44 = vpack.c.bf16 %v216_v40, %v213_v39  ;;  %v113_v46 = vld [vmem:[#allocation5 + $0x60] sm:$0xff]  ;;  %v994_v47 = vpack.c.bf16 %v223_v43, %v220_v42  ;;  %v114_v50 = vld [vmem:[#allocation5 + $0x68] sm:$0xff]  ;;  %v226_v51 = vld [vmem:[#allocation7 + $0xf8] sm:$0xff] }
  0x67   :  { %962 = vmatpush3.bf16.msra.mxu0 %v961_v14  ;;  %987 = vmatprep.subr.bf16.mxu1 %v986_v29  ;;  %v219_v48 = vld [vmem:[#allocation7 + $0xc0] sm:$0xff]  ;;  %v229_v52 = vld [vmem:[#allocation7 + $0x110] sm:$0xff]  ;;  %v973_v54 = vpack.c.bf16 %v114_v50, %v113_v46  ;;  %v228_v58 = vld [vmem:[#allocation7 + $0x108] sm:$0xff] }
  0x68   :  { %963 = vmatprep.subr.bf16.mxu0 %v1315_v0  ;;  %v996_v53 = vpack.c.bf16 %v222_v49, %v219_v48  ;;  %v115_v55 = vld [vmem:[#allocation5 + $0x70] sm:$0xff]  ;;  %v998_v56 = vpack.c.bf16 %v229_v52, %v226_v51  ;;  %v116_v59 = vld [vmem:[#allocation5 + $0x78] sm:$0xff]  ;;  %v232_v60 = vld [vmem:[#allocation7 + $0x128] sm:$0xff] }
  0x69   :  { %v225_v57 = vld [vmem:[#allocation7 + $0xf0] sm:$0xff]  ;;  %v235_v61 = vld [vmem:[#allocation7 + $0x140] sm:$0xff]  ;;  %v976_v63 = vpack.c.bf16 %v116_v59, %v115_v55  ;;  %v234_v4 = vld [vmem:[#allocation7 + $0x138] sm:$0xff] }
  0x6a   :  { %989 = vmatpush1.bf16.msra.mxu1 %v988_v35  ;;  %v1000_v62 = vpack.c.bf16 %v228_v58, %v225_v57  ;;  %v1002_v2 = vpack.c.bf16 %v235_v61, %v232_v60  ;;  %v231_v3 = vld [vmem:[#allocation7 + $0x120] sm:$0xff]  ;;  %v197_v5 = vld [vmem:[#allocation7 + $0x10] sm:$0xff]  ;;  %v200_v6 = vld [vmem:[#allocation7 + $0x28] sm:$0xff] }
  0x6b   :  { %965 = vmatpush3.bf16.msra.mxu0 %v964_v27  ;;  %991 = vmatprep.subr.bf16.mxu1 %v990_v38  ;;  %v1004_v7 = vpack.c.bf16 %v234_v4, %v231_v3  ;;  %v100_v8 = vld [vmem:[%s1523_s0] sm:$0xff]  ;;  %v1011_v9 = vpack.c.bf16 %v200_v6, %v197_v5  ;;  %v203_v10 = vld [vmem:[#allocation7 + $0x40] sm:$0xff]  ;;  %v209_v13 = vld [vmem:[#allocation7 + $0x70] sm:$0xff] }
  0x6c   :  { %966 = vmatprep.subr.bf16.mxu0 %v1315_v0  ;;  %v206_v11 = vld [vmem:[#allocation7 + $0x58] sm:$0xff]  ;;  %v212_v14 = vld [vmem:[#allocation7 + $0x88] sm:$0xff]  ;;  %v215_v16 = vld [vmem:[#allocation7 + $0xa0] sm:$0xff] }
  0x6d   :  { %v1014_v12 = vpack.c.bf16 %v206_v11, %v203_v10  ;;  %v1017_v15 = vpack.c.bf16 %v212_v14, %v209_v13  ;;  %v218_v17 = vld [vmem:[#allocation7 + $0xb8] sm:$0xff]  ;;  %v221_v19 = vld [vmem:[#allocation7 + $0xd0] sm:$0xff]  ;;  %v224_v20 = vld [vmem:[#allocation7 + $0xe8] sm:$0xff] }
  0x6e   :  { %993 = vmatpush1.bf16.msra.mxu1 %v992_v44  ;;  %v1020_v18 = vpack.c.bf16 %v218_v17, %v215_v16  ;;  %v1023_v21 = vpack.c.bf16 %v224_v20, %v221_v19  ;;  %v227_v22 = vld [vmem:[#allocation7 + $0x100] sm:$0xff]  ;;  %v230_v23 = vld [vmem:[#allocation7 + $0x118] sm:$0xff]  ;;  %v233_v25 = vld [vmem:[#allocation7 + $0x130] sm:$0xff] }
  0x6f   :  { %968 = vmatpush3.bf16.msra.mxu0 %v967_v36  ;;  %995 = vmatprep.subr.bf16.mxu1 %v994_v47  ;;  %v1026_v24 = vpack.c.bf16 %v230_v23, %v227_v22  ;;  %v236_v26 = vld [vmem:[#allocation7 + $0x148] sm:$0xff]  ;;  %v238_v28 = vld [vmem:[#allocation7 + $0x158] sm:$0xff]  ;;  %v241_v29 = vld [vmem:[#allocation7 + $0x170] sm:$0xff] }
  0x70   :  { %969 = vmatprep.subr.bf16.mxu0 %v1315_v0  ;;  %v1029_v27 = vpack.c.bf16 %v236_v26, %v233_v25  ;;  %v1006_v30 = vpack.c.bf16 %v241_v29, %v238_v28  ;;  %v237_v31 = vld [vmem:[#allocation7 + $0x150] sm:$0xff]  ;;  %v240_v32 = vld [vmem:[#allocation7 + $0x168] sm:$0xff]  ;;  %v239_v34 = vld [vmem:[#allocation7 + $0x160] sm:$0xff] }
  0x71   :  { %v1008_v33 = vpack.c.bf16 %v240_v32, %v237_v31  ;;  %v242_v35 = vld [vmem:[#allocation7 + $0x178] sm:$0xff]  ;;  %v401_v37 = vld [vmem:[#allocation8 + $0x8] sm:$0xff]  ;;  %v404_v38 = vld [vmem:[#allocation8 + $0x20] sm:$0xff] }
  0x72   :  { %997 = vmatpush1.bf16.msra.mxu1 %v996_v53  ;;  %v1032_v36 = vpack.c.bf16 %v242_v35, %v239_v34  ;;  %v1034_v39 = vpack.c.bf16 %v404_v38, %v401_v37  ;;  %v741_v40 = vld [vmem:[%s1529_s6] ss:$0 sm:$0xff]  ;;  %v400_v41 = vld [vmem:[#allocation8] sm:$0xff]  ;;  %v402_v43 = vld [vmem:[#allocation8 + $0x10] sm:$0xff] }
  0x73   :  { %971 = vmatpush3.bf16.msra.mxu0 %v970_v45  ;;  %999 = vmatprep.subr.bf16.mxu1 %v998_v56  ;;  %v403_v42 = vld [vmem:[#allocation8 + $0x18] sm:$0xff]  ;;  %v405_v44 = vld [vmem:[#allocation8 + $0x28] sm:$0xff]  ;;  %v410_v47 = vld [vmem:[#allocation8 + $0x50] sm:$0xff] }
  0x74   :  { %972 = vmatprep.subr.bf16.mxu0 %v1315_v0  ;;  %v407_v46 = vld [vmem:[#allocation8 + $0x38] sm:$0xff]  ;;  %v1036_v50 = vpack.c.bf16 %v403_v42, %v400_v41  ;;  %v406_v51 = vld [vmem:[#allocation8 + $0x30] sm:$0xff]  ;;  %v1067_v52 = vpack.c.bf16 %v405_v44, %v402_v43  ;;  %v409_v55 = vld [vmem:[#allocation8 + $0x48] sm:$0xff] }
  0x75   :  { %v408_v56 = vld [vmem:[#allocation8 + $0x40] sm:$0xff]  ;;  %v411_v57 = vld [vmem:[#allocation8 + $0x58] sm:$0xff]  ;;  %v413_v58 = vld [vmem:[#allocation8 + $0x68] sm:$0xff]  ;;  %v1040_v60 = vpack.c.bf16 %v409_v55, %v406_v51 }
  0x76   :  { %1001 = vmatpush1.bf16.msra.mxu1 %v1000_v62  ;;  %v416_v59 = vld [vmem:[#allocation8 + $0x80] sm:$0xff]  ;;  %v1070_v62 = vpack.c.bf16 %v411_v57, %v408_v56  ;;  %v414_v3 = vld [vmem:[#allocation8 + $0x70] sm:$0xff]  ;;  %v417_v4 = vld [vmem:[#allocation8 + $0x88] sm:$0xff] }
  0x77   :  { %974 = vmatpush3.bf16.msra.mxu0 %v973_v54  ;;  %1003 = vmatprep.subr.bf16.mxu1 %v1002_v2  ;;  %v1038_v54 = vpack.c.bf16 %v410_v47, %v407_v46  ;;  %v412_v61 = vld [vmem:[#allocation8 + $0x60] sm:$0xff]  ;;  %v415_v2 = vld [vmem:[#allocation8 + $0x78] sm:$0xff]  ;;  %v422_v6 = vld [vmem:[#allocation8 + $0xb0] sm:$0xff] }
  0x78   :  { %975 = vmatprep.subr.bf16.mxu0 %v1315_v0  ;;  %v419_v5 = vld [vmem:[#allocation8 + $0x98] sm:$0xff]  ;;  %v421_v11 = vld [vmem:[#allocation8 + $0xa8] sm:$0xff]  ;;  %v424_v17 = vld [vmem:[#allocation8 + $0xc0] sm:$0xff] }
  0x79   :  { %v1046_v10 = vpack.c.bf16 %v422_v6, %v419_v5  ;;  %v423_v13 = vld [vmem:[#allocation8 + $0xb8] sm:$0xff]  ;;  %v425_v14 = vld [vmem:[#allocation8 + $0xc8] sm:$0xff]  ;;  %v430_v26 = vld [vmem:[#allocation8 + $0xf0] sm:$0xff] }
  0x7a   :  { %1005 = vmatpush1.bf16.msra.mxu1 %v1004_v7  ;;  %v1044_v7 = vpack.c.bf16 %v415_v2, %v412_v61  ;;  %v427_v20 = vld [vmem:[#allocation8 + $0xd8] sm:$0xff]  ;;  %v429_v22 = vld [vmem:[#allocation8 + $0xe8] sm:$0xff]  ;;  %v436_v35 = vld [vmem:[#allocation8 + $0x120] sm:$0xff] }
  0x7b   :  { %977 = vmatpush3.bf16.msra.mxu0 %v976_v63  ;;  %1007 = vmatprep.subr.bf16.mxu1 %v1006_v30  ;;  %v1042_v63 = vpack.c.bf16 %v416_v59, %v413_v58  ;;  %v431_v23 = vld [vmem:[#allocation8 + $0xf8] sm:$0xff]  ;;  %v1052_v25 = vpack.c.bf16 %v427_v20, %v424_v17  ;;  %v433_v29 = vld [vmem:[#allocation8 + $0x108] sm:$0xff]  ;;  %v432_v30 = vld [vmem:[#allocation8 + $0x100] sm:$0xff] }
  0x7c   :  { %1010 = vmatprep.subr.bf16.mxu0 %v1315_v0  ;;  %v435_v31 = vld [vmem:[#allocation8 + $0x118] sm:$0xff]  ;;  %v437_v32 = vld [vmem:[#allocation8 + $0x128] sm:$0xff]  ;;  %v1056_v34 = vpack.c.bf16 %v433_v29, %v430_v26  ;;  %v446_v42 = vld [vmem:[#allocation8 + $0x170] sm:$0xff] }
  0x7d   :  { %v439_v38 = vld [vmem:[#allocation8 + $0x138] sm:$0xff]  ;;  %v442_v44 = vld [vmem:[#allocation8 + $0x150] sm:$0xff]  ;;  %v445_v47 = vld [vmem:[#allocation8 + $0x168] sm:$0xff] }
  0x7e   :  { %847 = vmatmul.mubr.f32.vlgmr.msra.gmra.mrb[0].mxu0 %v100_v8  ;;  %1009 = vmatpush1.bf16.msra.mxu1 %v1008_v33  ;;  %v418_v8 = vld [vmem:[#allocation8 + $0x90] sm:$0xff]  ;;  %v440_v33 = vld [vmem:[#allocation8 + $0x140] sm:$0xff]  ;;  %v443_v41 = vld [vmem:[#allocation8 + $0x158] sm:$0xff]  ;;  %v1060_v43 = vpack.c.bf16 %v439_v38, %v436_v35 }
  0x7f   :  { %1012 = vmatpush3.bf16.msra.mxu0 %v1011_v9  ;;  %881 = vmatprep.mubr.msk.f32.mxu0 %vm1316_vm0, %v1317_v1  ;;  %v1073_v9 = vpack.c.bf16 %v417_v4, %v414_v3  ;;  %v1048_v16 = vpack.c.bf16 %v421_v11, %v418_v8  ;;  %v1058_v37 = vpack.c.bf16 %v440_v33, %v437_v32  ;;  %v618_v56 = vld [vmem:[#allocation10 + $0x10] sm:$0xff]  ;;  %v619_v57 = vld [vmem:[#allocation10 + $0x18] sm:$0xff]  ;;  %v620_v59 = vld [vmem:[#allocation10 + $0x20] sm:$0xff] }
  0x80   :  { %1013 = vmatprep.subr.bf16.mxu0 %v1315_v0  ;;  %1035 = vmatprep.subr.bf16.mxu1 %v1034_v39  ;;  %v438_v39 = vld [vmem:[#allocation8 + $0x130] sm:$0xff]  ;;  %v1062_v46 = vpack.c.bf16 %v446_v42, %v443_v41  ;;  %v1094_v58 = vpack.c.bf16 %v619_v57, %v618_v56  ;;  %v624_v2 = vld [vmem:[#allocation10 + $0x40] sm:$0xff]  ;;  %v625_v3 = vld [vmem:[#allocation10 + $0x48] sm:$0xff] }
  0x81   :  { %v1103_v4 = vpack.c.bf16 %v625_v3, %v624_v2  ;;  %v626_v5 = vld [vmem:[#allocation10 + $0x50] sm:$0xff]  ;;  %v627_v6 = vld [vmem:[#allocation10 + $0x58] sm:$0xff]  ;;  %v628_v8 = vld [vmem:[#allocation10 + $0x60] sm:$0xff] }
  0x82   :  { %v630_v11 = vld [vmem:[#allocation10 + $0x70] sm:$0xff]  ;;  %v744_v33 = vld [vmem:[%s1529_s6 + $0x4] ss:$0 sm:$0xff] }
  0x83   :  { %1015 = vmatpush3.bf16.msra.mxu0 %v1014_v12  ;;  %v420_v12 = vld [vmem:[#allocation8 + $0xa0] sm:$0xff] }
  0x84   :  { %1016 = vmatprep.subr.bf16.mxu0 %v1315_v0 }
  0x87   :  { %1018 = vmatpush3.bf16.msra.mxu0 %v1017_v15  ;;  %v428_v15 = vld [vmem:[#allocation8 + $0xe0] sm:$0xff] }
  0x88   :  { %1019 = vmatprep.subr.bf16.mxu0 %v1315_v0  ;;  %v1050_v19 = vpack.c.bf16 %v428_v15, %v425_v14 }
  0x8b   :  { %1021 = vmatpush3.bf16.msra.mxu0 %v1020_v18  ;;  %v1076_v18 = vpack.c.bf16 %v423_v13, %v420_v12  ;;  %v631_v12 = vld [vmem:[#allocation10 + $0x78] sm:$0xff] }
  0x8c   :  { %1022 = vmatprep.subr.bf16.mxu0 %v1315_v0  ;;  %v1112_v13 = vpack.c.bf16 %v631_v12, %v630_v11 }
  0x8f   :  { %1024 = vmatpush3.bf16.msra.mxu0 %v1023_v21  ;;  %v426_v21 = vld [vmem:[#allocation8 + $0xd0] sm:$0xff] }
  0x90   :  { %1025 = vmatprep.subr.bf16.mxu0 %v1315_v0 }
  0x93   :  { %1027 = vmatpush3.bf16.msra.mxu0 %v1026_v24  ;;  %v434_v24 = vld [vmem:[#allocation8 + $0x110] sm:$0xff] }
  0x94   :  { %1028 = vmatprep.subr.bf16.mxu0 %v1315_v0  ;;  %v1054_v28 = vpack.c.bf16 %v434_v24, %v431_v23 }
  0x97   :  { %1030 = vmatpush3.bf16.msra.mxu0 %v1029_v27  ;;  %v1079_v27 = vpack.c.bf16 %v429_v22, %v426_v21 }
  0x98   :  { %1031 = vmatprep.subr.bf16.mxu0 %v1315_v0 }
  0x9b   :  { %1033 = vmatpush3.bf16.msra.mxu0 %v1032_v36  ;;  %v1082_v36 = vpack.c.bf16 %v435_v31, %v432_v30 }
  0x9c   :  { %1066 = vmatprep.subr.bf16.mxu0 %v1315_v0 }
 0x151   :  { %v189_v45 = vpop.f32.mrb[0].mxu0 }
 0x152   :  { %v190_v48 = vadd.f32 %v741_v40, %v189_v45  ;;  %v848_v49 = vpop.f32.mrb[1].mxu0  ;;  %v441_v40 = vld [vmem:[#allocation8 + $0x148] sm:$0xff] }
 0x153   :  { %v1085_v45 = vpack.c.bf16 %v441_v40, %v438_v39  ;;  %v447_v49 = vld [vmem:[#allocation8 + $0x178] sm:$0xff] }
 0x154   :  { %v193_v53 = vmax.f32 %v190_v48, 0.0  ;;  %v444_v48 = vld [vmem:[#allocation8 + $0x160] sm:$0xff] }
 0x155   :  { %v1088_v51 = vpack.c.bf16 %v447_v49, %v444_v48 }
 0x156   :  { %324 = vmatmul.mubr.f32.vlgmr.msra.gmra.mrb[0].mxu1 %v193_v53  ;;  %882 = vmatmul.mubr.f32.vlgmr.msra.gmra.mrb[2].mxu0 %v193_v53  ;;  %v616_v53 = vld [vmem:[#allocation10] sm:$0xff] }
 0x157   :  { %1037 = vmatpush1.bf16.msra.mxu1 %v1036_v50  ;;  %1068 = vmatpush3.bf16.msra.mxu0 %v1067_v52  ;;  %v1064_v50 = vpack.c.bf16 %v445_v47, %v442_v44  ;;  %v1475_v52 = vld [vmem:[#allocation2] sm:$0xff] }
 0x158   :  { %1039 = vmatprep.subr.bf16.mxu1 %v1038_v54  ;;  %1069 = vmatprep.subr.bf16.mxu0 %v1315_v0  ;;  %v617_v54 = vld [vmem:[#allocation10 + $0x8] sm:$0xff] }
 0x159   :  { %512 = vmatprep.mubr.f32.mxu1 %v1317_v1  ;;  %916 = vmatprep.mubr.msk.f32.mxu0 %vm1316_vm0, %v1317_v1  ;;  %v1091_v55 = vpack.c.bf16 %v617_v54, %v616_v53 }
 0x15b   :  { %1041 = vmatpush1.bf16.msra.mxu1 %v1040_v60  ;;  %1071 = vmatpush3.bf16.msra.mxu0 %v1070_v62  ;;  %v621_v60 = vld [vmem:[#allocation10 + $0x28] sm:$0xff]  ;;  %v622_v62 = vld [vmem:[#allocation10 + $0x30] sm:$0xff] }
 0x15c   :  { %1043 = vmatprep.subr.bf16.mxu1 %v1042_v63  ;;  %1072 = vmatprep.subr.bf16.mxu0 %v1315_v0  ;;  %v1097_v61 = vpack.c.bf16 %v621_v60, %v620_v59 }
 0x15f   :  { %1045 = vmatpush1.bf16.msra.mxu1 %v1044_v7  ;;  %1074 = vmatpush3.bf16.msra.mxu0 %v1073_v9  ;;  %v1106_v7 = vpack.c.bf16 %v627_v6, %v626_v5  ;;  %v629_v9 = vld [vmem:[#allocation10 + $0x68] sm:$0xff] }
 0x160   :  { %1047 = vmatprep.subr.bf16.mxu1 %v1046_v10  ;;  %1075 = vmatprep.subr.bf16.mxu0 %v1315_v0  ;;  %v1109_v10 = vpack.c.bf16 %v629_v9, %v628_v8 }
 0x163   :  { %1049 = vmatpush1.bf16.msra.mxu1 %v1048_v16  ;;  %1077 = vmatpush3.bf16.msra.mxu0 %v1076_v18  ;;  %v244_v16 = vlaneseq }
 0x164   :  { %1051 = vmatprep.subr.bf16.mxu1 %v1050_v19  ;;  %1078 = vmatprep.subr.bf16.mxu0 %v1315_v0  ;;  %v97_v19 = vld [vmem:[%s1529_s6 + $0x1] sm:$0x7] }
 0x165   :  { %v245_v17 = vshrl.u32 %v244_v16, 7 }
 0x167   :  { %1053 = vmatpush1.bf16.msra.mxu1 %v1052_v25  ;;  %1080 = vmatpush3.bf16.msra.mxu0 %v1079_v27  ;;  %v246_v18 = vsub.s32 0, %v245_v17  ;;  %v250_v24 = vsub.s32 1, %v245_v17  ;;  %v254_v32 = vsub.s32 2, %v245_v17 }
 0x168   :  { %1055 = vmatprep.subr.bf16.mxu1 %v1054_v28  ;;  %1081 = vmatprep.subr.bf16.mxu0 %v1315_v0 }
 0x169   :  { %v247_v20 = vrot.slane %v97_v19, %v246_v18 }
 0x16b   :  { %1057 = vmatpush1.bf16.msra.mxu1 %v1056_v34  ;;  %1083 = vmatpush3.bf16.msra.mxu0 %v1082_v36  ;;  %v255_v34 = vrot.slane %v97_v19, %v254_v32 }
 0x16c   :  { %1059 = vmatprep.subr.bf16.mxu1 %v1058_v37  ;;  %1084 = vmatprep.subr.bf16.mxu0 %v1315_v0 }
 0x16f   :  { %1061 = vmatpush1.bf16.msra.mxu1 %v1060_v43  ;;  %1086 = vmatpush3.bf16.msra.mxu0 %v1085_v45 }
 0x170   :  { %1063 = vmatprep.subr.bf16.mxu1 %v1062_v46  ;;  %1087 = vmatprep.subr.bf16.mxu0 %v1315_v0 }
 0x173   :  { %1065 = vmatpush1.bf16.msra.mxu1 %v1064_v50  ;;  %1089 = vmatpush3.bf16.msra.mxu0 %v1088_v51 }
 0x174   :  { %1090 = vmatprep.subr.bf16.mxu1 %v1315_v0 }
 0x176   :  { %513 = vmatmul.mubr.f32.vlgmr.msra.gmra.mrb[0].mxu1 %v1475_v52  ;;  %917 = vmatmul.mubr.f32.vlgmr.msra.gmra.mrb[4].mxu0 %v1475_v52 }
 0x177   :  { %951 = vmatprep.mubr.msk.f32.mxu1 %vm1316_vm0, %v1317_v1  ;;  %1092 = vmatpush3.bf16.msra.mxu1 %v1091_v55  ;;  %v623_v1 = vld [vmem:[#allocation10 + $0x38] sm:$0xff] }
 0x178   :  { %1093 = vmatprep.subr.bf16.mxu1 %v1315_v0  ;;  %v1100_v63 = vpack.c.bf16 %v623_v1, %v622_v62 }
 0x17b   :  { %1095 = vmatpush3.bf16.msra.mxu1 %v1094_v58 }
 0x17c   :  { %1096 = vmatprep.subr.bf16.mxu1 %v1315_v0 }
 0x17f   :  { %1098 = vmatpush3.bf16.msra.mxu1 %v1097_v61 }
 0x180   :  { %1099 = vmatprep.subr.bf16.mxu1 %v1315_v0 }
 0x183   :  { %1101 = vmatpush3.bf16.msra.mxu1 %v1100_v63 }
 0x184   :  { %1102 = vmatprep.subr.bf16.mxu1 %v1315_v0 }
 0x187   :  { %1104 = vmatpush3.bf16.msra.mxu1 %v1103_v4 }
 0x188   :  { %1105 = vmatprep.subr.bf16.mxu1 %v1315_v0 }
 0x18b   :  { %1107 = vmatpush3.bf16.msra.mxu1 %v1106_v7 }
 0x18c   :  { %1108 = vmatprep.subr.bf16.mxu1 %v1315_v0 }
 0x18f   :  { %1110 = vmatpush3.bf16.msra.mxu1 %v1109_v10 }
 0x190   :  { %1111 = vmatprep.subr.bf16.mxu1 %v1315_v0  ;;  %v251_v0 = vrot.slane %v97_v19, %v250_v24 }
 0x193   :  { %1113 = vmatpush3.bf16.msra.mxu1 %v1112_v13 }
 0x229   :  { %v396_v14 = vpop.f32.mrb[2].mxu0 }
 0x22a   :  { %v883_v15 = vpop.f32.mrb[3].mxu0  ;;  %v397_v38 = vadd.f32 %v396_v14, %v255_v34 }
 0x249   :  { %v514_v21 = vpop.f32.mrb[0].mxu1  ;;  %v585_v22 = vpop.f32.mrb[4].mxu0 }
 0x24a   :  { %v1114_v23 = vadd.f32 %v514_v21, %v247_v20  ;;  %v516_v25 = vpop.f32.mrb[1].mxu1  ;;  %v918_v26 = vpop.f32.mrb[5].mxu0  ;;  %v609_v35 = vadd.f32 %v744_v33, %v585_v22 }
 0x24b   :  { %v1115_v28 = vadd.f32 %v516_v25, %v251_v0 }
 0x24c   :  { %v742_v27 = vmul.f32 -1.442695, %v1114_v23 }
 0x24d   :  { %v743_v29 = vmul.f32 -1.442695, %v1115_v28 }
 0x24e   :  { %1132 = vpow2.f32 %v742_v27 }
 0x24f   :  { %1134 = vpow2.f32 %v743_v29 }
 0x258   :  { %v1133_v30 = vpop.eup %1132 }
 0x259   :  { %v593_v31 = vadd.f32 1.0, %v1133_v30  ;;  %v1135_v36 = vpop.eup %1134 }
 0x25a   :  { %v600_v40 = vadd.f32 1.0, %v1135_v36 }
 0x25b   :  { %1136 = vrcp.f32 %v593_v31 }
 0x265   :  { %v1137_v37 = vpop.eup %1136 }
 0x266   :  { %v610_v39 = vmul.f32 %v1137_v37, %v609_v35 }
 0x268   :  { %v611_v41 = vadd.f32 %v610_v39, %v397_v38 }
 0x26a   :  { %1138 = vtanh.f32 %v611_v41 }
 0x26b   :  { %1140 = vrcp.f32 %v600_v40 }
 0x274   :  { %v1139_v42 = vpop.eup %1138 }
 0x275   :  { %v613_v43 = vsub.f32 %v1475_v52, %v1139_v42  ;;  %v1141_v44 = vpop.eup %1140 }
 0x277   :  { %v614_v45 = vmul.f32 %v1141_v44, %v613_v43 }
 0x279   :  { %v615_v46 = vadd.f32 %v1139_v42, %v614_v45 }
 0x27b   :  { %952 = vmatmul.mubr.f32.vlgmr.msra.gmra.mrb[2].mxu1 %v615_v46  ;;  %708 = vst [vmem:[#allocation12] sm:$0xff] %v615_v46 }
 0x27c   :  { %1263 = shalt.err (!%p1260_p2)
}
 0x27d   :  { %s1264_s12 = scalar_lea.hbm %s1531_s8, 128 }
 0x27e   :  { %p1265_p3 = scmp.ne.s32.totalorder %s1531_s8, %s1264_s12  ;;  %p1268_p4 = scmp.lt.u32.totalorder %s1264_s12, %s1531_s8 }
 0x280   :  { %p1270_p5 = pnand %p1268_p4, %p1265_p3 }
 0x282   :  { %1273 = shalt.err (!%p1270_p5)
}
 0x283   :  { %729 = dma.vmem_to_hbm [thread:$0]  %s727_s30, 128, %s1531_s8, [#allocation13]   ;;  %v745_v47 = vld [vmem:[%s1529_s6 + $0x5] ss:$0 sm:$0xff] }
 0x284   :  { %s1319_s23 = smov [#allocation11]  }
 0x285   :  { %s716_s4 = sshll.u32 %s1319_s23, 4  ;;  %s717_s4 = int_to_ptr.vmem [resolvable:$true] %s716_s4 }
 0x286   :  { %s1274_s20 = scalar_lea.vmem %s717_s4, 128  ;;  %p1279_p7 = scmp.lt.s32.totalorder %s717_s4, %s717_s4 }
 0x287   :  { %p1275_p6 = scmp.ne.s32.totalorder %s717_s4, %s1274_s20  ;;  %p1280_p8 = scmp.lt.s32.totalorder %s1274_s20, %s1274_s20 }
 0x289   :  { %p1281_p9 = por %p1280_p8, %p1279_p7 }
 0x28b   :  { %p1282_p10 = pnand %p1281_p9, %p1275_p6 }
 0x34e   :  { %v704_v48 = vpop.f32.mrb[2].mxu1 }
 0x34f   :  { %v705_v49 = vadd.f32 %v745_v47, %v704_v48  ;;  %v953_v50 = vpop.f32.mrb[3].mxu1 }
 0x351   :  { %709 = vst [vmem:[#allocation11] sm:$0xff] %v705_v49 }
 0x352   :  { %1285 = shalt.err (!%p1282_p10)
}
 0x353   :  { %s1286_s3 = scalar_lea.hbm %s1530_s7, 128 }
 0x354   :  { %p1287_p11 = scmp.ne.s32.totalorder %s1530_s7, %s1286_s3  ;;  %p1290_p12 = scmp.lt.u32.totalorder %s1286_s3, %s1530_s7 }
 0x356   :  { %p1292_p13 = pnand %p1290_p12, %p1287_p11 }
 0x358   :  { %1295 = shalt.err (!%p1292_p13)
}
 0x359   :  { %719 = dma.vmem_to_hbm [thread:$0]  %s717_s4, 128, %s1530_s7, [#allocation4]  }
 0x35a   :  { %1302 = dma.done.wait [#allocation4], 128  }
 0x35b   :  { %1303 = vsyncadd [#allocation4], 4294967168 }
 0x35c   :  { %1304 = dma.done.wait [#allocation13], 128  }
 0x35d   :  { %1305 = vsyncadd [#allocation13], 4294967168 }
 0x35e   :  { %736 = vsyncpa [#allocation3], 1 }
 0x35f   :  { %737 = vsyncpa [#allocation6], 1 }
 0x360   :  { %738 = vsyncpa [#allocation9], 1 }
 0x361   :  { %739 = vsyncpa [#allocation4], 1 }
 0x362   :  { %740 = vsyncpa [#allocation13], 1 }

</bundles_post_ra>
